<compile_context>
chip_gen: v5e
topology: v5e:2x2
jax: 0.10.0
libtpu: 0.0.40
codegen_flags: <defaults>
</compile_context>

<pallas_src>
import functools

import jax
import jax.numpy as jnp
from jax.experimental import pallas as pl
from jax.experimental.pallas import tpu as pltpu


def _attention_kernel(x_ref, w3_ref, bias_ref, wo_ref, bout_ref, o_ref,
                      *, heads, dim_head, scale, mxu_dtype):
    """Fused attention for one batch element, all heads batched on the MXU."""
    G = 3 * heads

    x = x_ref[0]                                       # (N, C)   mxu_dtype
    w3 = w3_ref[...]                                   # (G, C, d) mxu_dtype

    # qkv projection: one head-batched contraction (g batches the 3*heads
    # projections), output lands directly in (g, N, d) layout -> no lane slices.
    xg = jnp.broadcast_to(x[None], (G,) + x.shape)     # (G, N, C)
    qkv = jax.lax.dot_general(
        xg, w3,
        dimension_numbers=(((2,), (1,)), ((0,), (0,))),
        preferred_element_type=jnp.float32)            # (G, N, d) f32 accum

    q = qkv[:heads].astype(mxu_dtype)                  # (H, N, d)
    k = qkv[heads:2 * heads].astype(mxu_dtype)         # (H, N, d)
    v = qkv[2 * heads:].astype(mxu_dtype)              # (H, N, d)

    # logits: batched over heads, contract dim_head  -> (H, N, N), f32
    dots = jax.lax.dot_general(
        q, k,
        dimension_numbers=(((2,), (2,)), ((0,), (0,))),
        preferred_element_type=jnp.float32)
    dots = dots * scale + bias_ref[...]                # relative positional bias (f32)

    # softmax in f32; normalization via EUP approx reciprocal (VPU stays free).
    dots = dots - jnp.max(dots, axis=-1, keepdims=True)
    p = jnp.exp(dots)
    p = p * pl.reciprocal(jnp.sum(p, axis=-1, keepdims=True), approx=True)

    # context: batched over heads, contract key axis -> (H, N, d), f32 accum
    ctx = jax.lax.dot_general(
        p.astype(mxu_dtype), v,
        dimension_numbers=(((2,), (1,)), ((0,), (0,))),
        preferred_element_type=jnp.float32)

    # output projection: per-head (N, d) @ (d, oup), then reduce over heads.
    # (Replaces the lane-axis concat + single wide matmul.)
    proj = jax.lax.dot_general(
        ctx.astype(mxu_dtype), wo_ref[...],
        dimension_numbers=(((2,), (1,)), ((0,), (0,))),
        preferred_element_type=jnp.float32)            # (H, N, oup)
    out = jnp.sum(proj, axis=0) + bout_ref[0]          # (N, oup), f32

    o_ref[0] = out.astype(o_ref.dtype)


def attention_forward(x, wqkv, bias_hnn, wout, bout, *, heads, dim_head, scale,
                      mxu_dtype=jnp.bfloat16):
    B, N, C = x.shape
    inner = heads * dim_head
    oup = wout.shape[1]
    G = 3 * heads
    out_dtype = x.dtype

    # ---- wrapper-side layout plumbing (free) ------------------------------
    # wqkv (C, 3*inner), column order [q|k|v] x [head-major, d] ->
    # (3, heads, C, d) -> (G, C, d): the kernel reads q/k/v per head without
    # slicing 8-lane windows out of a 96-lane-wide result.
    w3 = wqkv.reshape(C, 3, heads, dim_head).transpose(1, 2, 0, 3)
    w3 = w3.reshape(G, C, dim_head).astype(mxu_dtype)
    wo = wout.reshape(heads, dim_head, oup).astype(mxu_dtype)
    x_in = x.astype(mxu_dtype)                          # bf16 MXU operands
    bias_f32 = bias_hnn.astype(jnp.float32)             # softmax math stays f32
    bout2 = bout.reshape(1, oup).astype(jnp.float32)

    kernel = functools.partial(_attention_kernel, heads=heads, dim_head=dim_head,
                               scale=scale, mxu_dtype=mxu_dtype)

    # Advisory cost estimate so XLA overlaps the bias-gather glue with the call.
    flops = 2 * B * (N * C * G * dim_head            # qkv projection
                     + 2 * heads * N * N * dim_head  # QK^T and PV
                     + N * inner * oup)              # output projection
    transcendentals = B * heads * N * N              # exp
    bytes_accessed = (x_in.size * x_in.dtype.itemsize
                      + w3.size * w3.dtype.itemsize
                      + bias_f32.size * 4
                      + wo.size * wo.dtype.itemsize
                      + bout2.size * 4
                      + B * N * oup * jnp.dtype(out_dtype).itemsize)

    return pl.pallas_call(
        kernel,
        out_shape=jax.ShapeDtypeStruct((B, N, oup), out_dtype),
        grid_spec=pltpu.PrefetchScalarGridSpec(
            num_scalar_prefetch=0,
            grid=(B,),
            in_specs=[
                pl.BlockSpec((1, N, C), lambda b: (b, 0, 0)),              # x (per batch)
                pl.BlockSpec((G, C, dim_head), lambda b: (0, 0, 0)),       # qkv weights
                pl.BlockSpec((heads, N, N), lambda b: (0, 0, 0)),          # relative bias
                pl.BlockSpec((heads, dim_head, oup), lambda b: (0, 0, 0)), # out weights
                pl.BlockSpec((1, oup), lambda b: (0, 0)),                  # out bias
            ],
            out_specs=pl.BlockSpec((1, N, oup), lambda b: (b, 0, 0)),
        ),
        compiler_params=pltpu.CompilerParams(dimension_semantics=("parallel",)),
        cost_estimate=pl.CostEstimate(flops=flops,
                                      transcendentals=transcendentals,
                                      bytes_accessed=bytes_accessed),
    )(x_in, w3, bias_f32, wo, bout2)


def make_relative_bias(table, ih, iw):
    """Reproduces the PyTorch relative_index construction + gather -> (heads, n, n)."""
    n = ih * iw
    coords = jnp.stack(jnp.meshgrid(jnp.arange(ih), jnp.arange(iw), indexing="ij"))
    coords = coords.reshape(2, -1)                                   # (2, n)
    rel = coords[:, :, None] - coords[:, None, :]                    # (2, n, n)
    rel = rel.at[0].add(ih - 1)
    rel = rel.at[1].add(iw - 1)
    rel = rel.at[0].multiply(2 * iw - 1)
    rel_index = jnp.transpose(rel, (1, 2, 0)).sum(-1).reshape(-1)    # (n*n,)
    bias = table[rel_index]                                          # (n*n, heads)
    return bias.reshape(n, n, bias.shape[-1]).transpose(2, 0, 1)     # (heads, n, n)


def reference(x, wqkv, bias_hnn, wout, bout, *, heads, dim_head, scale):
    B, N, C = x.shape
    inner = heads * dim_head
    qkv = x @ wqkv
    q, k, v = qkv[..., :inner], qkv[..., inner:2 * inner], qkv[..., 2 * inner:]

    def split(t):
        return t.reshape(B, N, heads, dim_head).transpose(0, 2, 1, 3)

    q, k, v = split(q), split(k), split(v)
    dots = jnp.einsum("bhnd,bhmd->bhnm", q, k) * scale + bias_hnn[None]
    attn = jax.nn.softmax(dots, axis=-1)
    out = jnp.einsum("bhnm,bhmd->bhnd", attn, v)
    out = out.transpose(0, 2, 1, 3).reshape(B, N, inner)
    return out @ wout + bout


if __name__ == "__main__":
    # Small config consistent with the module's forward
    B = 2
    inp = 32
    oup = 32
    ih, iw = 4, 4
    heads = 4
    dim_head = 8
    N = ih * iw
    inner = heads * dim_head
    scale = dim_head ** (-0.5)

    key = jax.random.PRNGKey(0)
    k_x, k_tab, k_qkv, k_out, k_b = jax.random.split(key, 5)

    x = jax.random.normal(k_x, (B, N, inp), dtype=jnp.float32)
    # PyTorch inits the bias table to zeros; use small random values so the
    # gather/bias path is actually exercised (deterministic, in-script).
    rel_table = 0.02 * jax.random.normal(k_tab, ((2 * ih - 1) * (2 * iw - 1), heads),
                                         dtype=jnp.float32)
    wqkv = 0.1 * jax.random.normal(k_qkv, (inp, inner * 3), dtype=jnp.float32)   # Linear, no bias
    wout = 0.1 * jax.random.normal(k_out, (inner, oup), dtype=jnp.float32)
    bout = 0.1 * jax.random.normal(k_b, (oup,), dtype=jnp.float32)
    # dropout=0.0 -> to_out's Dropout is identity (eval semantics)

    bias_hnn = make_relative_bias(rel_table, ih, iw)                 # (heads, N, N)

    out = attention_forward(x, wqkv, bias_hnn, wout, bout,
                            heads=heads, dim_head=dim_head, scale=scale)
    out = jax.block_until_ready(out)

    ref = reference(x, wqkv, bias_hnn, wout, bout,
                    heads=heads, dim_head=dim_head, scale=scale)
    assert out.shape == (B, N, oup)
    # bf16 MXU operands + EUP approx reciprocal -> slightly looser tolerance
    # than a pure-f32 kernel (per the review's correctness note).
    assert jnp.allclose(out, ref, rtol=2e-2, atol=2e-2), "mismatch vs JAX reference"
    print("KERNEL_OK")
</pallas_src>

<mosaic_0001>
module attributes {stable_mosaic.version = 11 : i64} {
  func.func @_attention_kernel(%arg0: i32, %arg1: memref<1x16x32xbf16, #tpu.memory_space<vmem>>, %arg2: memref<12x32x8xbf16, #tpu.memory_space<vmem>>, %arg3: memref<4x16x16xf32, #tpu.memory_space<vmem>>, %arg4: memref<4x8x32xbf16, #tpu.memory_space<vmem>>, %arg5: memref<1x32xf32, #tpu.memory_space<vmem>>, %arg6: memref<1x16x32xf32, #tpu.memory_space<vmem>>) attributes {dimension_semantics = [#tpu.dimension_semantics<parallel>], iteration_bounds = array<i64: 2>, scalar_prefetch = 0 : i64, scratch_operands = 0 : i64, tpu.core_type = #tpu.core_type<tc>, window_params = [{transform_indices = @transform_0, window_bounds = array<i64: 1, 16, 32>}, {pipeline_mode = #tpu.pipeline_mode<synchronous>, transform_indices = @transform_1, window_bounds = array<i64: 12, 32, 8>}, {pipeline_mode = #tpu.pipeline_mode<synchronous>, transform_indices = @transform_2, window_bounds = array<i64: 4, 16, 16>}, {pipeline_mode = #tpu.pipeline_mode<synchronous>, transform_indices = @transform_3, window_bounds = array<i64: 4, 8, 32>}, {pipeline_mode = #tpu.pipeline_mode<synchronous>, transform_indices = @transform_4, window_bounds = array<i64: 1, 32>}, {transform_indices = @transform_5, window_bounds = array<i64: 1, 16, 32>}]} {
    %c0 = arith.constant 0 : index
    %c0_0 = arith.constant 0 : index
    %c0_1 = arith.constant 0 : index
    %0 = vector.load %arg1[%c0, %c0_0, %c0_1] : memref<1x16x32xbf16, #tpu.memory_space<vmem>>, vector<1x16x32xbf16>
    %1 = vector.shape_cast %0 : vector<1x16x32xbf16> to vector<16x32xbf16>
    %c0_2 = arith.constant 0 : index
    %c0_3 = arith.constant 0 : index
    %c0_4 = arith.constant 0 : index
    %2 = vector.load %arg2[%c0_2, %c0_3, %c0_4] : memref<12x32x8xbf16, #tpu.memory_space<vmem>>, vector<12x32x8xbf16>
    %3 = vector.shape_cast %1 : vector<16x32xbf16> to vector<1x16x32xbf16>
    %4 = vector.shape_cast %3 : vector<1x16x32xbf16> to vector<1x16x32xbf16>
    %5 = vector.broadcast %4 : vector<1x16x32xbf16> to vector<12x16x32xbf16>
    %cst = arith.constant dense<0.000000e+00> : vector<12x16x8xf32>
    %6 = tpu.matmul %5, %2, %cst {dimension_numbers = #tpu.dot_dimension_numbers<[2], [1], [1], [2], [0, 0, 0, 1, 1, 2], [0], [0]>} : vector<12x16x32xbf16>, vector<12x32x8xbf16>, vector<12x16x8xf32> -> vector<12x16x8xf32>
    %7 = vector.extract_strided_slice %6 {offsets = [0, 0, 0], sizes = [4, 16, 8], strides = [1, 1, 1]} : vector<12x16x8xf32> to vector<4x16x8xf32>
    %8 = arith.truncf %7 : vector<4x16x8xf32> to vector<4x16x8xbf16>
    %9 = vector.extract_strided_slice %6 {offsets = [4, 0, 0], sizes = [4, 16, 8], strides = [1, 1, 1]} : vector<12x16x8xf32> to vector<4x16x8xf32>
    %10 = arith.truncf %9 : vector<4x16x8xf32> to vector<4x16x8xbf16>
    %11 = vector.extract_strided_slice %6 {offsets = [8, 0, 0], sizes = [4, 16, 8], strides = [1, 1, 1]} : vector<12x16x8xf32> to vector<4x16x8xf32>
    %12 = arith.truncf %11 : vector<4x16x8xf32> to vector<4x16x8xbf16>
    %cst_5 = arith.constant dense<0.000000e+00> : vector<4x16x16xf32>
    %13 = tpu.matmul %8, %10, %cst_5 {dimension_numbers = #tpu.dot_dimension_numbers<[2], [2], [1], [1], [0, 0, 0, 1, 1, 1], [0], [0]>} : vector<4x16x8xbf16>, vector<4x16x8xbf16>, vector<4x16x16xf32> -> vector<4x16x16xf32>
    %cst_6 = arith.constant 0.353553385 : f32
    %14 = vector.broadcast %cst_6 : f32 to vector<4x16x16xf32>
    %15 = arith.mulf %13, %14 : vector<4x16x16xf32>
    %c0_7 = arith.constant 0 : index
    %c0_8 = arith.constant 0 : index
    %c0_9 = arith.constant 0 : index
    %16 = vector.load %arg3[%c0_7, %c0_8, %c0_9] : memref<4x16x16xf32, #tpu.memory_space<vmem>>, vector<4x16x16xf32>
    %17 = arith.addf %15, %16 : vector<4x16x16xf32>
    %cst_10 = arith.constant dense<0xFF800000> : vector<4x16xf32>
    %18 = vector.multi_reduction <maximumf>, %17, %cst_10 [2] : vector<4x16x16xf32> to vector<4x16xf32>
    %19 = vector.shape_cast %18 : vector<4x16xf32> to vector<4x16x1xf32>
    %20 = vector.broadcast %19 : vector<4x16x1xf32> to vector<4x16x16xf32>
    %21 = arith.subf %17, %20 : vector<4x16x16xf32>
    %22 = math.exp %21 : vector<4x16x16xf32>
    %cst_11 = arith.constant dense<0.000000e+00> : vector<4x16xf32>
    %23 = vector.multi_reduction <add>, %22, %cst_11 [2] : vector<4x16x16xf32> to vector<4x16xf32>
    %24 = vector.shape_cast %23 : vector<4x16xf32> to vector<4x16x1xf32>
    %25 = tpu.reciprocal %24 {approx = true} : vector<4x16x1xf32> -> vector<4x16x1xf32>
    %26 = vector.broadcast %25 : vector<4x16x1xf32> to vector<4x16x16xf32>
    %27 = arith.mulf %22, %26 : vector<4x16x16xf32>
    %28 = arith.truncf %27 : vector<4x16x16xf32> to vector<4x16x16xbf16>
    %cst_12 = arith.constant dense<0.000000e+00> : vector<4x16x8xf32>
    %29 = tpu.matmul %28, %12, %cst_12 {dimension_numbers = #tpu.dot_dimension_numbers<[2], [1], [1], [2], [0, 0, 0, 1, 1, 2], [0], [0]>} : vector<4x16x16xbf16>, vector<4x16x8xbf16>, vector<4x16x8xf32> -> vector<4x16x8xf32>
    %30 = arith.truncf %29 : vector<4x16x8xf32> to vector<4x16x8xbf16>
    %c0_13 = arith.constant 0 : index
    %c0_14 = arith.constant 0 : index
    %c0_15 = arith.constant 0 : index
    %31 = vector.load %arg4[%c0_13, %c0_14, %c0_15] : memref<4x8x32xbf16, #tpu.memory_space<vmem>>, vector<4x8x32xbf16>
    %cst_16 = arith.constant dense<0.000000e+00> : vector<4x16x32xf32>
    %32 = tpu.matmul %30, %31, %cst_16 {dimension_numbers = #tpu.dot_dimension_numbers<[2], [1], [1], [2], [0, 0, 0, 1, 1, 2], [0], [0]>} : vector<4x16x8xbf16>, vector<4x8x32xbf16>, vector<4x16x32xf32> -> vector<4x16x32xf32>
    %cst_17 = arith.constant dense<0.000000e+00> : vector<16x32xf32>
    %33 = vector.multi_reduction <add>, %32, %cst_17 [0] : vector<4x16x32xf32> to vector<16x32xf32>
    %c0_18 = arith.constant 0 : index
    %c0_19 = arith.constant 0 : index
    %34 = vector.load %arg5[%c0_18, %c0_19] : memref<1x32xf32, #tpu.memory_space<vmem>>, vector<1x32xf32>
    %35 = vector.shape_cast %34 : vector<1x32xf32> to vector<32xf32>
    %36 = vector.shape_cast %35 : vector<32xf32> to vector<1x32xf32>
    %37 = vector.broadcast %36 : vector<1x32xf32> to vector<16x32xf32>
    %38 = arith.addf %33, %37 : vector<16x32xf32>
    %c0_20 = arith.constant 0 : index
    %c0_21 = arith.constant 0 : index
    %c0_22 = arith.constant 0 : index
    %39 = vector.load %arg6[%c0_20, %c0_21, %c0_22] : memref<1x16x32xf32, #tpu.memory_space<vmem>>, vector<1x16x32xf32>
    %40 = vector.shape_cast %39 : vector<1x16x32xf32> to vector<16x32xf32>
    %41 = vector.shape_cast %38 : vector<16x32xf32> to vector<1x16x32xf32>
    tpu.vector_store %arg6[%c0_20, %c0_21, %c0_22], %41 {strides = array<i32>} : memref<1x16x32xf32, #tpu.memory_space<vmem>>, vector<1x16x32xf32>,
    return
  }
  func.func @transform_0(%arg0: i32) -> (i32, i32, i32) {
    %c0_i32 = arith.constant 0 : i32
    %c0_i32_0 = arith.constant 0 : i32
    %c0_i32_1 = arith.constant 0 : i32
    return %arg0, %c0_i32, %c0_i32_0 : i32, i32, i32
  }
  func.func @transform_1(%arg0: i32) -> (i32, i32, i32) {
    %c0_i32 = arith.constant 0 : i32
    %c0_i32_0 = arith.constant 0 : i32
    %c0_i32_1 = arith.constant 0 : i32
    %c0_i32_2 = arith.constant 0 : i32
    return %c0_i32, %c0_i32_0, %c0_i32_1 : i32, i32, i32
  }
  func.func @transform_2(%arg0: i32) -> (i32, i32, i32) {
    %c0_i32 = arith.constant 0 : i32
    %c0_i32_0 = arith.constant 0 : i32
    %c0_i32_1 = arith.constant 0 : i32
    %c0_i32_2 = arith.constant 0 : i32
    return %c0_i32, %c0_i32_0, %c0_i32_1 : i32, i32, i32
  }
  func.func @transform_3(%arg0: i32) -> (i32, i32, i32) {
    %c0_i32 = arith.constant 0 : i32
    %c0_i32_0 = arith.constant 0 : i32
    %c0_i32_1 = arith.constant 0 : i32
    %c0_i32_2 = arith.constant 0 : i32
    return %c0_i32, %c0_i32_0, %c0_i32_1 : i32, i32, i32
  }
  func.func @transform_4(%arg0: i32) -> (i32, i32) {
    %c0_i32 = arith.constant 0 : i32
    %c0_i32_0 = arith.constant 0 : i32
    %c0_i32_1 = arith.constant 0 : i32
    return %c0_i32, %c0_i32_0 : i32, i32
  }
  func.func @transform_5(%arg0: i32) -> (i32, i32, i32) {
    %c0_i32 = arith.constant 0 : i32
    %c0_i32_0 = arith.constant 0 : i32
    %c0_i32_1 = arith.constant 0 : i32
    return %arg0, %c0_i32, %c0_i32_0 : i32, i32, i32
  }
}

</mosaic_0001>

<bundles_post_ra>
// kernel: tpu_custom_call.1
= control target key start
LH: loop header
LB: loop body
LE: loop exit
PB: predicated region body
PF: predicated region fallthrough
CT: control target
= control target key end

     0   :  { %10 = vsyncpa [#allocation3], 0  ;;  %s1777_s0 = inlined_call_operand.vmem [shape: bf16[2,16,32], index: 0, kind: input, shape index: {}]   ;;  %s1778_s1 = inlined_call_operand.vmem [shape: bf16[12,32,8], index: 1, kind: input, shape index: {}]   ;;  %s1779_s2 = inlined_call_operand.vmem [shape: f32[4,16,16], index: 2, kind: input, shape index: {}]   ;;  %s1780_s3 = inlined_call_operand.vmem [shape: bf16[4,8,32], index: 3, kind: input, shape index: {}]   ;;  %s1781_s4 = inlined_call_operand.vmem [shape: f32[1,32], index: 4, kind: input, shape index: {}]   ;;  %s1782_s5 = inlined_call_operand.hbm [shape: f32[2,16,32], index: 5, kind: output, shape index: {}]  }
   0x1   :  { %12 = vsyncpa [#allocation3 + $0x1], 0  ;;  %s1519_s18 = smov 0   ;;  %s1521_s19 = smov 0  }
   0x2   :  { %s1523_s20 = smov 0   ;;  %s1525_s21 = smov 0  }
   0x3 LB: > { %s1540_s22 = sadd.s32 4294967295, %s1485_s21   ;;  %s1186_s23 = sadd.s32 4294967294, %s1485_s21   ;;  %s1485_s21 = sphi %s1525_s21, %s1788_s21   ;;  %s1481_s20 = sphi %s1523_s20, %s1787_s20   ;;  %s1477_s19 = sphi %s1521_s19, %s1786_s19   ;;  %s1473_s18 = sphi %s1519_s18, %s1785_s18  }
   0x4   : > { %s1544_s24 = sadd.s32 1, %s1485_s21   ;;  %s135_s25 = sadd.s32 1, %s1481_s20 }
   0x5   : > { %s132_s26 = ssub.s32 %s1485_s21, %s1544_s24  ;;  %p145_p0 = scmp.ne.s32.totalorder %s1481_s20, %s1477_s19 }
   0x6   : > { %p133_p1 = scmp.eq.s32.totalorder %s132_s26, 0  ;;  %p146_p2 = scmp.eq.s32.totalorder %s1540_s22, 1 }
   0x7   : > { %p151_p3 = scmp.ne.s32.totalorder %s1477_s19, %s1473_s18  ;;  %p152_p4 = scmp.eq.s32.totalorder %s1186_s23, 1 }
   0x8   : > { %s1555_s27 = scalar_select %p133_p1, %s1481_s20, %s135_s25  }
   0x9   : > { %p1557_p5 = por %p146_p2, %p145_p0  ;;  %p1561_p6 = por %p152_p4, %p151_p3 }
   0xa   : > { %p1189_p7 = scmp.ge.s32.totalorder %s1485_s21, 1  ;;  %p190_p8 = scmp.lt.s32.totalorder %s1485_s21, 3 }
   0xc   : > { %p191_p9 = pnand %p1189_p7, %p190_p8 }
   0xd   : > { %p218_p10 = scmp.lt.s32.totalorder (!%p191_p9), %s1540_s22, 1  ;;  %s215_s23 = sand.u32 (!%p191_p9), 1, %s1477_s19  }
   0xe   : > { %194 = sbr.rel (%p191_p9) target bundleno = 907 (0x38b), region = 40  ;;  %s1190_s30 = sshll.u32 (!%p191_p9), %s215_s23, 4 }
   0xf   : > { %s217_s10 = scalar_lea.vmem (!%p191_p9), [#allocation2], %s1190_s30  ;;  %s1109_s12 = scalar_lea.sflag (!%p191_p9), [#allocation3], %s215_s23 }
  0x13   : > { %v1325_v0 = vld [vmem:[%s1778_s1 + $0x8] sm:$0xff]  ;;  %v1327_v1 = vld [vmem:[%s1778_s1 + $0x18] sm:$0xff]  ;;  %v1324_v4 = vld [vmem:[%s1778_s1] sm:$0xff]  ;;  %s219_s17 = scalar_select %p218_p10, %s1540_s22, 1  ;;  %vm291_vm0 = vcmask 261120   ;;  %vm629_vm1 = vcmask 64512  }
  0x14   : > { %v1329_v2 = vld [vmem:[%s1778_s1 + $0x28] sm:$0xff]  ;;  %v1331_v3 = vld [vmem:[%s1778_s1 + $0x38] sm:$0xff]  ;;  %301 = vmatpush.bf16.msra.mxu0 %v1325_v0  ;;  %327 = vmatpush.bf16.msra.mxu1 %v1327_v1  ;;  %v1326_v5 = vld [vmem:[%s1778_s1 + $0x10] sm:$0xff]  ;;  %vm764_vm2 = vcmask 130048   ;;  %vm993_vm3 = vcmask 1043456  }
  0x15   : > { %353 = vmatpush.bf16.msra.mxu2 %v1329_v2  ;;  %379 = vmatpush.bf16.msra.mxu3 %v1331_v3  ;;  %v1328_v6 = vld [vmem:[%s1778_s1 + $0x20] sm:$0xff]  ;;  %v1330_v7 = vld [vmem:[%s1778_s1 + $0x30] sm:$0xff]  ;;  %s1322_s6 = sshll.u32 %s219_s17, 3  ;;  %v1333_v8 = vld [vmem:[%s1778_s1 + $0x48] sm:$0xff]  ;;  %s1443_s17 = scalar_lea.hbm %s1782_s5, 32 }
  0x16   : > { %v1335_v9 = vld [vmem:[%s1778_s1 + $0x58] sm:$0xff]  ;;  %s222_s13 = scalar_lea.vmem %s1777_s0, %s1322_s6  ;;  %v1337_v11 = vld [vmem:[%s1778_s1 + $0x68] sm:$0xff]  ;;  %v1332_v13 = vld [vmem:[%s1778_s1 + $0x40] sm:$0xff]  ;;  %s1348_s6 = sshll.u32 %s1540_s22, 4 }
  0x17   : > { %v1323_v10 = vld [vmem:[%s222_s13] sm:$0xff]  ;;  %v1339_v12 = vld [vmem:[%s1778_s1 + $0x78] sm:$0xff]  ;;  %v1334_v14 = vld [vmem:[%s1778_s1 + $0x50] sm:$0xff]  ;;  %s1120_s9 = scalar_lea.hbm %s1782_s5, %s1348_s6  ;;  %s1121_s22 = sshll.u32 %s217_s10, 4  ;;  %s1122_s22 = int_to_ptr.vmem [resolvable:$true] %s1121_s22 }
  0x18   : > { %302 = vmatpush.bf16.msra.mxu0 %v1324_v4  ;;  %328 = vmatpush.bf16.msra.mxu1 %v1326_v5  ;;  %v1336_v15 = vld [vmem:[%s1778_s1 + $0x60] sm:$0xff]  ;;  %v1338_v16 = vld [vmem:[%s1778_s1 + $0x70] sm:$0xff]  ;;  %v1345_v17 = vld [vmem:[%s1778_s1 + $0xa8] sm:$0xff]  ;;  %s1123_s11 = sshll.u32 %s1120_s9, 4  ;;  %s1124_s11 = int_to_ptr.hbm [resolvable:$true] %s1123_s11 }
  0x19   : > { %354 = vmatpush.bf16.msra.mxu2 %v1328_v6  ;;  %380 = vmatpush.bf16.msra.mxu3 %v1330_v7  ;;  %v1341_v18 = vld [vmem:[%s1778_s1 + $0x88] sm:$0xff]  ;;  %v1343_v19 = vld [vmem:[%s1778_s1 + $0x98] sm:$0xff]  ;;  %v1344_v20 = vld [vmem:[%s1778_s1 + $0xa0] sm:$0xff]  ;;  %s1437_s13 = sshra.s32 %s1124_s11, 4  ;;  %s1438_s13 = int_to_ptr.hbm [resolvable:$true] %s1437_s13 }
  0x1a   : > { %v1340_v21 = vld [vmem:[%s1778_s1 + $0x80] sm:$0xff]  ;;  %v1342_v22 = vld [vmem:[%s1778_s1 + $0x90] sm:$0xff]  ;;  %v1347_v23 = vld [vmem:[%s1778_s1 + $0xb8] sm:$0xff]  ;;  %s1439_s14 = scalar_lea.hbm %s1438_s13, 16  ;;  %p1444_p0 = scmp.lt.s32.totalorder %s1438_s13, %s1782_s5 }
  0x1b   : > { %1205 = vmatmul.msk.bf16.vlgmr.msra.gmra.mxu0 %vm291_vm0, %v1323_v10  ;;  %1214 = vmatmul.msk.bf16.vlgmr.msra.gmra.mxu1 %vm291_vm0, %v1323_v10  ;;  %v1346_v24 = vld [vmem:[%s1778_s1 + $0xb0] sm:$0xff]  ;;  %p1440_p11 = scmp.ne.s32.totalorder %s1438_s13, %s1439_s14  ;;  %p1445_p1 = scmp.lt.s32.totalorder %s1443_s17, %s1439_s14 }
  0x1c   : > { %405 = vmatpush.bf16.msrb.mxu0 %v1333_v8  ;;  %431 = vmatpush.bf16.msrb.mxu1 %v1335_v9 }
  0x1d   : > { %1223 = vmatmul.msk.bf16.vlgmr.msra.gmra.mxu2 %vm291_vm0, %v1323_v10  ;;  %1232 = vmatmul.msk.bf16.vlgmr.msra.gmra.mxu3 %vm291_vm0, %v1323_v10  ;;  %p1441_p12 = pnand %p1440_p11, %p1557_p5  ;;  %p1446_p2 = por %p1445_p1, %p1444_p0 }
  0x1e   : > { %457 = vmatpush.bf16.msrb.mxu2 %v1337_v11  ;;  %483 = vmatpush.bf16.msrb.mxu3 %v1339_v12 }
  0x1f   : > { %p1442_p13 = pneg %p1441_p12 }
  0x20   : > { %406 = vmatpush.bf16.msrb.mxu0 %v1332_v13  ;;  %432 = vmatpush.bf16.msrb.mxu1 %v1334_v14 }
  0x21   : > { %p1447_p3 = pnand %p1446_p2, %p1442_p13 }
  0x22   : > { %458 = vmatpush.bf16.msrb.mxu2 %v1336_v15  ;;  %484 = vmatpush.bf16.msrb.mxu3 %v1338_v16 }
  0x24   : > { %509 = vmatpush.bf16.msra.mxu0 %v1341_v18  ;;  %535 = vmatpush.bf16.msra.mxu1 %v1343_v19 }
  0x26   : > { %561 = vmatpush.bf16.msra.mxu2 %v1345_v17  ;;  %587 = vmatpush.bf16.msra.mxu3 %v1347_v23 }
  0x28   : > { %510 = vmatpush.bf16.msra.mxu0 %v1340_v21  ;;  %536 = vmatpush.bf16.msra.mxu1 %v1342_v22 }
  0x2a   : > { %562 = vmatpush.bf16.msra.mxu2 %v1344_v20  ;;  %588 = vmatpush.bf16.msra.mxu3 %v1346_v24 }
  0x2b   : > { %1241 = vmatmul.msk.bf16.vlgmr.msrb.gmra.mxu0 %vm291_vm0, %v1323_v10  ;;  %1250 = vmatmul.msk.bf16.vlgmr.msrb.gmra.mxu1 %vm291_vm0, %v1323_v10 }
  0x2d   : > { %1259 = vmatmul.msk.bf16.vlgmr.msrb.gmra.mxu2 %vm291_vm0, %v1323_v10  ;;  %1268 = vmatmul.msk.bf16.vlgmr.msrb.gmra.mxu3 %vm291_vm0, %v1323_v10 }
  0x3b   : > { %1277 = vmatmul.msk.bf16.vlgmr.msra.gmra.mxu0 %vm291_vm0, %v1323_v10  ;;  %1286 = vmatmul.msk.bf16.vlgmr.msra.gmra.mxu1 %vm291_vm0, %v1323_v10 }
  0x3d   : > { %1295 = vmatmul.msk.bf16.vlgmr.msra.gmra.mxu2 %vm291_vm0, %v1323_v10  ;;  %1304 = vmatmul.msk.bf16.vlgmr.msra.gmra.mxu3 %vm291_vm0, %v1323_v10 }
  0x98   : > { %v304_v25 = vpop.f32.mrf.mxu0  ;;  %v330_v26 = vpop.f32.mrf.mxu1 }
  0x99   : > { %v595_v47 = vpack.c.bf16 %v304_v25, %v304_v25  ;;  %v597_v49 = vpack.c.bf16 %v330_v26, %v330_v26 }
  0x9b   : > { %v621_v62 = vunpack.c.l.b16 %v595_v47  ;;  %v652_v63 = vunpack.c.l.b16 %v597_v49 }
  0xa0   : > { %v356_v27 = vpop.f32.mrf.mxu2  ;;  %v382_v28 = vpop.f32.mrf.mxu3 }
  0xa1   : > { %v306_v29 = vpop.f32.mrf.mxu0  ;;  %v332_v30 = vpop.f32.mrf.mxu1  ;;  %v601_v5 = vpack.c.bf16 %v382_v28, %v382_v28  ;;  %v599_v10 = vpack.c.bf16 %v356_v27, %v356_v27 }
  0xa2   : > { %v596_v50 = vpack.c.bf16 %v306_v29, %v306_v29  ;;  %v598_v53 = vpack.c.bf16 %v332_v30, %v332_v30 }
  0xa3   : > { %v712_v15 = vunpack.c.l.b16 %v601_v5  ;;  %v682_v18 = vunpack.c.l.b16 %v599_v10 }
  0xa4   : > { %v622_v0 = vunpack.c.l.b16 %v596_v50  ;;  %v653_v1 = vunpack.c.l.b16 %v598_v53  ;;  %v748_v50 = vld [vmem:[%s1779_s2] sm:$0xff] }
  0xa6   : > { %v623_v11 = vpack.c.b16 %v622_v0, %v621_v62  ;;  %v654_v12 = vpack.c.b16 %v653_v1, %v652_v63  ;;  %v752_v62 = vld [vmem:[%s1779_s2 + $0x20] sm:$0xff] }
  0xa8   : > { %v358_v31 = vpop.f32.mrf.mxu2  ;;  %v384_v32 = vpop.f32.mrf.mxu3 }
  0xa9   : > { %v408_v33 = vpop.f32.mrf.mxu0  ;;  %v434_v34 = vpop.f32.mrf.mxu1  ;;  %v600_v6 = vpack.c.bf16 %v358_v31, %v358_v31  ;;  %v602_v7 = vpack.c.bf16 %v384_v32, %v384_v32 }
  0xaa   : > { %v603_v35 = vpack.c.bf16 %v408_v33, %v408_v33  ;;  %v605_v36 = vpack.c.bf16 %v434_v34, %v434_v34 }
  0xab   : > { %v683_v16 = vunpack.c.l.b16 %v600_v6  ;;  %v713_v17 = vunpack.c.l.b16 %v602_v7 }
  0xac   : > { %v626_v41 = vunpack.c.l.b16 %v603_v35  ;;  %v657_v42 = vunpack.c.l.b16 %v605_v36 }
  0xad   : > { %v684_v19 = vpack.c.b16 %v683_v16, %v682_v18  ;;  %v714_v20 = vpack.c.b16 %v713_v17, %v712_v15 }
  0xb0   : > { %v460_v37 = vpop.f32.mrf.mxu2  ;;  %v486_v38 = vpop.f32.mrf.mxu3 }
  0xb1   : > { %v410_v39 = vpop.f32.mrf.mxu0  ;;  %v436_v40 = vpop.f32.mrf.mxu1  ;;  %v609_v48 = vpack.c.bf16 %v486_v38, %v486_v38  ;;  %v607_v54 = vpack.c.bf16 %v460_v37, %v460_v37 }
  0xb2   : > { %v604_v43 = vpack.c.bf16 %v410_v39, %v410_v39  ;;  %v606_v44 = vpack.c.bf16 %v436_v40, %v436_v40 }
  0xb3   : > { %v717_v59 = vunpack.c.l.b16 %v609_v48  ;;  %v687_v2 = vunpack.c.l.b16 %v607_v54 }
  0xb4   : > { %v627_v45 = vunpack.c.l.b16 %v604_v43  ;;  %v658_v46 = vunpack.c.l.b16 %v606_v44 }
  0xb6   : > { %v628_v51 = vpack.c.b16 %v627_v45, %v626_v41  ;;  %v659_v52 = vpack.c.b16 %v658_v46, %v657_v42 }
  0xb8   : > { %v462_v55 = vpop.f32.mrf.mxu2  ;;  %v488_v56 = vpop.f32.mrf.mxu3  ;;  %v634_v57 = vsel %vm629_vm1, %v628_v51, 0  ;;  %v664_v58 = vsel %vm629_vm1, %v659_v52, 0 }
  0xb9   : > { %v608_v60 = vpack.c.bf16 %v462_v55, %v462_v55  ;;  %v610_v61 = vpack.c.bf16 %v488_v56, %v488_v56  ;;  %643 = vmatpush.bf16.xpose.msrb.mxu0 %v634_v57  ;;  %673 = vmatpush.bf16.xpose.msrb.mxu1 %v664_v58  ;;  %v512_v21 = vpop.f32.mrf.mxu0  ;;  %v538_v22 = vpop.f32.mrf.mxu1  ;;  %v749_v55 = vld [vmem:[%s1779_s2 + $0x8] sm:$0xff] }
  0xba   : > { %v611_v23 = vpack.c.bf16 %v512_v21, %v512_v21  ;;  %v613_v25 = vpack.c.bf16 %v538_v22, %v538_v22 }
  0xbb   : > { %v688_v3 = vunpack.c.l.b16 %v608_v60  ;;  %v718_v4 = vunpack.c.l.b16 %v610_v61  ;;  %v754_v61 = vld [vmem:[%s1779_s2 + $0x30] sm:$0xff] }
  0xbc   : > { %v868_v26 = vunpack.c.l.b16 %v611_v23  ;;  %v896_v29 = vunpack.c.l.b16 %v613_v25 }
  0xbd   : > { %v689_v8 = vpack.c.b16 %v688_v3, %v687_v2  ;;  %v719_v9 = vpack.c.b16 %v718_v4, %v717_v59 }
  0xbf   : > { %v694_v13 = vsel %vm629_vm1, %v689_v8, 0  ;;  %v724_v14 = vsel %vm629_vm1, %v719_v9, 0  ;;  %v755_v8 = vld [vmem:[%s1779_s2 + $0x38] sm:$0xff]  ;;  %v753_v9 = vld [vmem:[%s1779_s2 + $0x28] sm:$0xff] }
  0xc0   : > { %703 = vmatpush.bf16.xpose.msrb.mxu2 %v694_v13  ;;  %733 = vmatpush.bf16.xpose.msrb.mxu3 %v724_v14  ;;  %v564_v24 = vpop.f32.mrf.mxu2  ;;  %v590_v35 = vpop.f32.mrf.mxu3 }
  0xc1   : > { %1305 = vmatmul.msk.bf16.vlgmr.msrb.gmra.mxu0 %vm629_vm1, %v623_v11  ;;  %1306 = vmatmul.msk.bf16.vlgmr.msrb.gmra.mxu1 %vm629_vm1, %v654_v12  ;;  %v514_v27 = vpop.f32.mrf.mxu0  ;;  %v540_v28 = vpop.f32.mrf.mxu1  ;;  %v615_v32 = vpack.c.bf16 %v564_v24, %v564_v24  ;;  %v617_v42 = vpack.c.bf16 %v590_v35, %v590_v35 }
  0xc2   : > { %v612_v30 = vpack.c.bf16 %v514_v27, %v514_v27  ;;  %v614_v31 = vpack.c.bf16 %v540_v28, %v540_v28 }
  0xc3   : > { %v924_v39 = vunpack.c.l.b16 %v615_v32  ;;  %v952_v45 = vunpack.c.l.b16 %v617_v42 }
  0xc4   : > { %v869_v33 = vunpack.c.l.b16 %v612_v30  ;;  %v897_v34 = vunpack.c.l.b16 %v614_v31 }
  0xc6   : > { %v870_v37 = vpack.c.b16 %v869_v33, %v868_v26  ;;  %v898_v38 = vpack.c.b16 %v897_v34, %v896_v29 }
  0xc7   : > { %1307 = vmatmul.msk.bf16.vlgmr.msrb.gmra.mxu2 %vm629_vm1, %v684_v19  ;;  %1308 = vmatmul.msk.bf16.vlgmr.msrb.gmra.mxu3 %vm629_vm1, %v714_v20  ;;  %v750_v19 = vld [vmem:[%s1779_s2 + $0x10] sm:$0xff]  ;;  %v751_v20 = vld [vmem:[%s1779_s2 + $0x18] sm:$0xff] }
  0xc8   : > { %v566_v36 = vpop.f32.mrf.mxu2  ;;  %882 = vmatpush.bf16.msra.mxu0 %v870_v37  ;;  %910 = vmatpush.bf16.msra.mxu1 %v898_v38  ;;  %v592_v44 = vpop.f32.mrf.mxu3 }
  0xc9   : > { %v616_v40 = vpack.c.bf16 %v566_v36, %v566_v36  ;;  %v618_v46 = vpack.c.bf16 %v592_v44, %v592_v44 }
  0xcb   : > { %v925_v41 = vunpack.c.l.b16 %v616_v40  ;;  %v953_v47 = vunpack.c.l.b16 %v618_v46 }
  0xcd   : > { %v926_v43 = vpack.c.b16 %v925_v41, %v924_v39  ;;  %v954_v48 = vpack.c.b16 %v953_v47, %v952_v45 }
  0xcf   : > { %938 = vmatpush.bf16.msra.mxu2 %v926_v43  ;;  %966 = vmatpush.bf16.msra.mxu3 %v954_v48 }
 0x13e   : > { %v645_v49 = vpop.f32.mrf.mxu0  ;;  %v675_v57 = vpop.f32.mrf.mxu1 }
 0x13f   : > { %v740_v51 = vmul.f32 0.35355338, %v645_v49  ;;  %v742_v15 = vmul.f32 0.35355338, %v675_v57 }
 0x141   : > { %v1667_v52 = vadd.f32 %v748_v50, %v740_v51  ;;  %v758_v21 = vadd.f32 %v750_v19, %v742_v15 }
 0x143   : > { %v765_v53 = vsel %vm764_vm2, %v1667_v52, -inf  ;;  %v771_v23 = vsel %vm764_vm2, %v758_v21, -inf }
 0x144   : > { %766 = vmax.xlane.f32.xlu2 %v765_v53 }
 0x146   : > { %v647_v54 = vpop.f32.mrf.mxu0  ;;  %v677_v12 = vpop.f32.mrf.mxu1 }
 0x147   : > { %v741_v56 = vmul.f32 0.35355338, %v647_v54  ;;  %v743_v16 = vmul.f32 0.35355338, %v677_v12 }
 0x149   : > { %v757_v58 = vadd.f32 %v749_v55, %v741_v56  ;;  %v759_v22 = vadd.f32 %v751_v20, %v743_v16 }
 0x14a   : > { %v705_v59 = vpop.f32.mrf.mxu2  ;;  %v735_v60 = vpop.f32.mrf.mxu3 }
 0x14b   : > { %v744_v63 = vmul.f32 0.35355338, %v705_v59  ;;  %v746_v0 = vmul.f32 0.35355338, %v735_v60  ;;  %v768_v1 = vsel %vm764_vm2, %v757_v58, -inf  ;;  %v774_v24 = vsel %vm764_vm2, %v759_v22, -inf }
 0x14c   : > { %769 = vmax.xlane.f32.xlu2 %v768_v1 }
 0x14d   : > { %v762_v2 = vadd.f32 %v754_v61, %v746_v0  ;;  %v760_v3 = vadd.f32 %v752_v62, %v744_v63 }
 0x14f   : > { %v783_v4 = vsel %vm764_vm2, %v762_v2, -inf  ;;  %v777_v5 = vsel %vm764_vm2, %v760_v3, -inf }
 0x150   : > { %784 = vmax.xlane.f32.xlu1 %v783_v4  ;;  %778 = vmax.xlane.f32.xlu0 %v777_v5 }
 0x152   : > { %v707_v6 = vpop.f32.mrf.mxu2  ;;  %v737_v7 = vpop.f32.mrf.mxu3 }
 0x153   : > { %v745_v10 = vmul.f32 0.35355338, %v707_v6  ;;  %v747_v11 = vmul.f32 0.35355338, %v737_v7 }
 0x155   : > { %v763_v13 = vadd.f32 %v755_v8, %v747_v11  ;;  %v761_v14 = vadd.f32 %v753_v9, %v745_v10 }
 0x157   : > { %v786_v17 = vsel %vm764_vm2, %v763_v13, -inf  ;;  %v780_v18 = vsel %vm764_vm2, %v761_v14, -inf }
 0x158   : > { %787 = vmax.xlane.f32.xlu1 %v786_v17  ;;  %781 = vmax.xlane.f32.xlu0 %v780_v18 }
 0x160   : > { %772 = vmax.xlane.f32.xlu0 %v771_v23  ;;  %775 = vmax.xlane.f32.xlu1 %v774_v24 }
 0x1b7   : > { %v767_v25 = vpop.xlane.xlu2 %766 }
 0x1b8   : > { %v789_v43 = vsub.f32 %v1667_v52, %v767_v25 }
 0x1ba   : > { %v797_v46 = vmul.f32 1.442695, %v789_v43 }
 0x1bf   : > { %v770_v26 = vpop.xlane.xlu2 %769 }
 0x1c0   : > { %v790_v31 = vsub.f32 %v757_v58, %v770_v26 }
 0x1c2   : > { %v799_v34 = vmul.f32 1.442695, %v790_v31 }
 0x1c3   : > { %v785_v27 = vpop.xlane.xlu1 %784  ;;  %v779_v28 = vpop.xlane.xlu0 %778 }
 0x1c4   : > { %v795_v29 = vsub.f32 %v762_v2, %v785_v27  ;;  %v793_v30 = vsub.f32 %v760_v3, %v779_v28 }
 0x1c6   : > { %v809_v32 = vmul.f32 1.442695, %v795_v29  ;;  %v805_v33 = vmul.f32 1.442695, %v793_v30 }
 0x1c8   : > { %1391 = vpow2.f32 %v809_v32 }
 0x1c9   : > { %1393 = vpow2.f32 %v805_v33 }
 0x1ca   : > { %1395 = vpow2.f32 %v799_v34 }
 0x1cb   : > { %v788_v35 = vpop.xlane.xlu1 %787  ;;  %v782_v36 = vpop.xlane.xlu0 %781 }
 0x1cc   : > { %v796_v37 = vsub.f32 %v763_v13, %v788_v35  ;;  %v794_v38 = vsub.f32 %v761_v14, %v782_v36 }
 0x1ce   : > { %v1392_v39 = vpop.eup %1391  ;;  %v811_v40 = vmul.f32 1.442695, %v796_v37  ;;  %v807_v41 = vmul.f32 1.442695, %v794_v38 }
 0x1cf   : > { %v1394_v42 = vpop.eup %1393  ;;  %v831_v44 = vsel %vm764_vm2, %v1392_v39, 0.0 }
 0x1d0   : > { %1397 = vpow2.f32 %v811_v40  ;;  %832 = vadd.xlane.f32.xlu1 %v831_v44  ;;  %v825_v45 = vsel %vm764_vm2, %v1394_v42, 0.0  ;;  %v1396_v48 = vpop.eup %1395 }
 0x1d1   : > { %1399 = vpow2.f32 %v807_v41  ;;  %826 = vadd.xlane.f32.xlu2 %v825_v45  ;;  %v816_v56 = vsel %vm764_vm2, %v1396_v48, 0.0  ;;  %v983_v45 = vld [vmem:[%s1780_s3 + $0x8] sm:$0xf] }
 0x1d2   : > { %1401 = vpow2.f32 %v797_v46  ;;  %v984_v46 = vld [vmem:[%s1780_s3 + $0xc] sm:$0xf] }
 0x1d3   : > { %v773_v47 = vpop.xlane.xlu0 %772  ;;  %v776_v50 = vpop.xlane.xlu1 %775 }
 0x1d4   : > { %v791_v49 = vsub.f32 %v758_v21, %v773_v47  ;;  %v792_v55 = vsub.f32 %v759_v22, %v776_v50  ;;  %v1045_v47 = vsel %vm993_vm3, %v983_v45, 0 }
 0x1d5   : > { %1054 = vmatpush.bf16.msrb.mxu2 %v1045_v47 }
 0x1d6   : > { %v1398_v51 = vpop.eup %1397  ;;  %v801_v53 = vmul.f32 1.442695, %v791_v49  ;;  %v803_v58 = vmul.f32 1.442695, %v792_v55  ;;  %v981_v49 = vld [vmem:[%s1780_s3] sm:$0xf] }
 0x1d7   : > { %v1400_v54 = vpop.eup %1399  ;;  %v834_v52 = vsel %vm764_vm2, %v1398_v51, 0.0  ;;  %v995_v50 = vsel %vm993_vm3, %v981_v49, 0 }
 0x1d8   : > { %1403 = vpow2.f32 %v801_v53  ;;  %v828_v57 = vsel %vm764_vm2, %v1400_v54, 0.0  ;;  %817 = vadd.xlane.f32.xlu1 %v816_v56  ;;  %v1402_v59 = vpop.eup %1401  ;;  %1004 = vmatpush.bf16.msrb.mxu0 %v995_v50 }
 0x1d9   : > { %829 = vadd.xlane.f32.xlu0 %v828_v57  ;;  %835 = vadd.xlane.f32.xlu2 %v834_v52  ;;  %1405 = vpow2.f32 %v803_v58  ;;  %v813_v62 = vsel %vm764_vm2, %v1402_v59, 0.0 }
 0x1de   : > { %v1404_v60 = vpop.eup %1403 }
 0x1df   : > { %v819_v61 = vsel %vm764_vm2, %v1404_v60, 0.0  ;;  %v1406_v63 = vpop.eup %1405 }
 0x1e0   : > { %v822_v0 = vsel %vm764_vm2, %v1406_v63, 0.0 }
 0x1e1   : > { %814 = vadd.xlane.f32.xlu0 %v813_v62  ;;  %820 = vadd.xlane.f32.xlu2 %v819_v61 }
 0x1e9   : > { %823 = vadd.xlane.f32.xlu0 %v822_v0 }
 0x243   : > { %v833_v1 = vpop.xlane.xlu1 %832 }
 0x244   : > { %v827_v2 = vpop.xlane.xlu2 %826 }
 0x245   : > { %1407 = vrcp.f32 %v827_v2 }
 0x246   : > { %1409 = vrcp.f32 %v833_v1 }
 0x24b   : > { %v818_v3 = vpop.xlane.xlu1 %817  ;;  %v1408_v6 = vpop.eup %1407 }
 0x24c   : > { %v830_v4 = vpop.xlane.xlu0 %829  ;;  %v836_v5 = vpop.xlane.xlu2 %835  ;;  %v849_v8 = vmul.f32 %v1408_v6, %v1394_v42 }
 0x24d   : > { %1411 = vrcp.f32 %v830_v4  ;;  %v1410_v7 = vpop.eup %1409 }
 0x24e   : > { %1413 = vrcp.f32 %v836_v5  ;;  %v851_v9 = vmul.f32 %v1410_v7, %v1392_v39  ;;  %v857_v12 = vpack.c.bf16 %v849_v8, %v849_v8 }
 0x24f   : > { %1415 = vrcp.f32 %v818_v3 }
 0x250   : > { %v859_v17 = vpack.c.bf16 %v851_v9, %v851_v9  ;;  %v919_v21 = vunpack.c.l.b16 %v857_v12 }
 0x252   : > { %v947_v24 = vunpack.c.l.b16 %v859_v17 }
 0x253   : > { %v1412_v10 = vpop.eup %1411 }
 0x254   : > { %v1414_v11 = vpop.eup %1413  ;;  %v850_v13 = vmul.f32 %v1412_v10, %v1400_v54  ;;  %v815_v14 = vpop.xlane.xlu0 %814 }
 0x255   : > { %v821_v15 = vpop.xlane.xlu2 %820  ;;  %v1416_v16 = vpop.eup %1415  ;;  %v852_v18 = vmul.f32 %v1414_v11, %v1398_v51  ;;  %1417 = vrcp.f32 %v815_v14  ;;  %v982_v51 = vld [vmem:[%s1780_s3 + $0x4] sm:$0xf] }
 0x256   : > { %v858_v19 = vpack.c.bf16 %v850_v13, %v850_v13  ;;  %1419 = vrcp.f32 %v821_v15  ;;  %v846_v23 = vmul.f32 %v1416_v16, %v1396_v48  ;;  %v1070_v48 = vsel %vm993_vm3, %v984_v46, 0 }
 0x257   : > { %v860_v20 = vpack.c.bf16 %v852_v18, %v852_v18  ;;  %1079 = vmatpush.bf16.msrb.mxu3 %v1070_v48  ;;  %v1020_v53 = vsel %vm993_vm3, %v982_v51, 0 }
 0x258   : > { %v920_v22 = vunpack.c.l.b16 %v858_v19  ;;  %v854_v29 = vpack.c.bf16 %v846_v23, %v846_v23  ;;  %1029 = vmatpush.bf16.msrb.mxu1 %v1020_v53 }
 0x259   : > { %v948_v25 = vunpack.c.l.b16 %v860_v20 }
 0x25a   : > { %v921_v26 = vpack.c.b16 %v920_v22, %v919_v21  ;;  %v864_v34 = vunpack.c.l.b16 %v854_v29 }
 0x25b   : > { %v1418_v27 = vpop.eup %1417  ;;  %v949_v28 = vpack.c.b16 %v948_v25, %v947_v24 }
 0x25c   : > { %v845_v30 = vmul.f32 %v1418_v27, %v1402_v59  ;;  %v824_v31 = vpop.xlane.xlu0 %823  ;;  %1311 = vmatmul.msk.bf16.vlgmr.msra.gmra.mxu2 %vm764_vm2, %v921_v26  ;;  %v1420_v32 = vpop.eup %1419  ;;  %v1390_v26 = vld [vmem:[%s1781_s4] ss:$0 sm:$0xff] }
 0x25d   : > { %1421 = vrcp.f32 %v824_v31  ;;  %1312 = vmatmul.msk.bf16.vlgmr.msra.gmra.mxu3 %vm764_vm2, %v949_v28  ;;  %v847_v36 = vmul.f32 %v1420_v32, %v1404_v60 }
 0x25e   : > { %v853_v33 = vpack.c.bf16 %v845_v30, %v845_v30 }
 0x25f   : > { %v855_v39 = vpack.c.bf16 %v847_v36, %v847_v36 }
 0x260   : > { %v863_v35 = vunpack.c.l.b16 %v853_v33 }
 0x261   : > { %v891_v42 = vunpack.c.l.b16 %v855_v39 }
 0x262   : > { %v865_v37 = vpack.c.b16 %v864_v34, %v863_v35 }
 0x263   : > { %v1422_v38 = vpop.eup %1421 }
 0x264   : > { %v848_v40 = vmul.f32 %v1422_v38, %v1406_v63  ;;  %1309 = vmatmul.msk.bf16.vlgmr.msra.gmra.mxu0 %vm764_vm2, %v865_v37 }
 0x266   : > { %v856_v41 = vpack.c.bf16 %v848_v40, %v848_v40 }
 0x268   : > { %v892_v43 = vunpack.c.l.b16 %v856_v41 }
 0x26a   : > { %v893_v44 = vpack.c.b16 %v892_v43, %v891_v42 }
 0x26c   : > { %1310 = vmatmul.msk.bf16.vlgmr.msra.gmra.mxu1 %vm764_vm2, %v893_v44 }
 0x2df   : > { %v940_v54 = vpop.f32.mrf.mxu2 }
 0x2e0   : > { %v968_v55 = vpop.f32.mrf.mxu3  ;;  %v977_v56 = vpack.c.bf16 %v940_v54, %v940_v54 }
 0x2e1   : > { %v884_v52 = vpop.f32.mrf.mxu0  ;;  %v979_v57 = vpack.c.bf16 %v968_v55, %v968_v55 }
 0x2e2   : > { %v973_v59 = vpack.c.bf16 %v884_v52, %v884_v52  ;;  %v1038_v1 = vunpack.c.l.b16 %v977_v56 }
 0x2e3   : > { %v1063_v4 = vunpack.c.l.b16 %v979_v57 }
 0x2e4   : > { %v987_v6 = vunpack.c.l.b16 %v973_v59 }
 0x2e7   : > { %v942_v58 = vpop.f32.mrf.mxu2 }
 0x2e8   : > { %v978_v60 = vpack.c.bf16 %v942_v58, %v942_v58  ;;  %v970_v61 = vpop.f32.mrf.mxu3 }
 0x2e9   : > { %v980_v62 = vpack.c.bf16 %v970_v61, %v970_v61  ;;  %v886_v63 = vpop.f32.mrf.mxu0  ;;  %v912_v0 = vpop.f32.mrf.mxu1 }
 0x2ea   : > { %v1039_v2 = vunpack.c.l.b16 %v978_v60  ;;  %v974_v3 = vpack.c.bf16 %v886_v63, %v886_v63  ;;  %v975_v11 = vpack.c.bf16 %v912_v0, %v912_v0 }
 0x2eb   : > { %v1064_v5 = vunpack.c.l.b16 %v980_v62 }
 0x2ec   : > { %v1040_v7 = vpack.c.b16 %v1039_v2, %v1038_v1  ;;  %v988_v8 = vunpack.c.l.b16 %v974_v3  ;;  %v1013_v14 = vunpack.c.l.b16 %v975_v11 }
 0x2ed   : > { %v1065_v9 = vpack.c.b16 %v1064_v5, %v1063_v4 }
 0x2ee   : > { %v989_v10 = vpack.c.b16 %v988_v8, %v987_v6  ;;  %1315 = vmatmul.msk.bf16.vlgmr.msrb.gmra.mxu2 %vm629_vm1, %v1040_v7 }
 0x2ef   : > { %1316 = vmatmul.msk.bf16.vlgmr.msrb.gmra.mxu3 %vm629_vm1, %v1065_v9 }
 0x2f0   : > { %1313 = vmatmul.msk.bf16.vlgmr.msrb.gmra.mxu0 %vm629_vm1, %v989_v10 }
 0x2f1   : > { %v914_v12 = vpop.f32.mrf.mxu1 }
 0x2f2   : > { %v976_v13 = vpack.c.bf16 %v914_v12, %v914_v12 }
 0x2f4   : > { %v1014_v15 = vunpack.c.l.b16 %v976_v13 }
 0x2f6   : > { %v1015_v16 = vpack.c.b16 %v1014_v15, %v1013_v14 }
 0x2f8   : > { %1314 = vmatmul.msk.bf16.vlgmr.msrb.gmra.mxu1 %vm629_vm1, %v1015_v16 }
 0x36d   : > { %v1006_v17 = vpop.f32.mrf.mxu0 }
 0x36e   : > { %v1086_v21 = vsel %vm291_vm0, %v1006_v17, 0.0 }
 0x371   : > { %v1056_v18 = vpop.f32.mrf.mxu2 }
 0x372   : > { %v1081_v19 = vpop.f32.mrf.mxu3  ;;  %v1089_v24 = vsel %vm291_vm0, %v1056_v18, 0.0 }
 0x373   : > { %v1091_v27 = vsel %vm291_vm0, %v1081_v19, 0.0 }
 0x375   : > { %v1031_v20 = vpop.f32.mrf.mxu1  ;;  %v1008_v28 = vpop.f32.mrf.mxu0 }
 0x376   : > { %v1087_v22 = vsel %vm291_vm0, %v1031_v20, 0.0  ;;  %v1093_v33 = vsel %vm291_vm0, %v1008_v28, 0.0 }
 0x377   : > { %v1088_v23 = vadd.f32 %v1087_v22, %v1086_v21 }
 0x379   : > { %v1090_v25 = vadd.f32 %v1089_v24, %v1088_v23  ;;  %v1058_v31 = vpop.f32.mrf.mxu2 }
 0x37a   : > { %v1083_v35 = vpop.f32.mrf.mxu3  ;;  %v1096_v37 = vsel %vm291_vm0, %v1058_v31, 0.0 }
 0x37b   : > { %v1092_v29 = vadd.f32 %v1091_v27, %v1090_v25  ;;  %v1098_v39 = vsel %vm291_vm0, %v1083_v35, 0.0 }
 0x37d   : > { %v1104_v30 = vadd.f32 %v1390_v26, %v1092_v29  ;;  %v1033_v32 = vpop.f32.mrf.mxu1 }
 0x37e   : > { %v1094_v34 = vsel %vm291_vm0, %v1033_v32, 0.0 }
 0x37f   : > { %v1095_v36 = vadd.f32 %v1094_v34, %v1093_v33  ;;  %1106 = vst.msk [vmem:[%s217_s10] sm:$0xff] %vm291_vm0, %v1104_v30 }
 0x381   : > { %v1097_v38 = vadd.f32 %v1096_v37, %v1095_v36 }
 0x383   : > { %v1099_v40 = vadd.f32 %v1098_v39, %v1097_v38 }
 0x385   : > { %v1105_v41 = vadd.f32 %v1390_v26, %v1099_v40 }
 0x387   : > { %1107 = vst.msk [vmem:[%s217_s10 + $0x8] sm:$0xff] %vm291_vm0, %v1105_v41 }
 0x388   : > { %1450 = shalt.err (!%p1447_p3)
}
 0x389   : > { %s1487_s23 = smov 128   ;;  %s1488_s30 = smov 8  }
 0x38a   : > { %1349 = dma.vmem_to_hbm [thread:$0]  (%p1557_p5), %s1122_s22, 256, %s1124_s11, %s1109_s12, %s1487_s23, %s1487_s23, %s1488_s30  }
 0x38b PF: > { %p1355_p4 = scmp.ge.s32.totalorder %s1485_s21, 2  ;;  %s1138_s6 = sand.u32 1, %s1473_s18  }
 0x38c   : > { %s1139_s7 = scalar_lea.sflag [#allocation3], %s1138_s6 }
 0x38d   : > { %p1352_p7 = pnand %p1355_p4, %p1561_p6 }
 0x38f   : > { %p1353_p8 = pneg %p1352_p7 }
 0x391   : > { %1468 = dma.done.wait (%p1353_p8), %s1139_s7, 256  }
 0x392   : > { %1470 = vsyncadd (%p1353_p8), %s1139_s7, 4294967040  ;;  %p15_p9 = scmp.ge.s32.totalorder %s1544_s24, 4   ;;  %s1785_s18 = smov %s1477_s19 }
 0x393   : > { %s1786_s19 = smov %s1481_s20  ;;  %s1787_s20 = smov %s1555_s27 }
 0x394   : > { %s1788_s21 = smov %s1544_s24  ;;  %17 = sbr.rel (!%p15_p9) target bundleno = 3 (0x3), region = 75 }
 0x399   :  { %1145 = vsyncpa [#allocation3], 1 }
 0x39a   :  { %1147 = vsyncpa [#allocation3 + $0x1], 1 }

</bundles_post_ra>
